<compile_context>
chip_gen: v5e
topology: v5e:2x2
jax: 0.10.0
libtpu: 0.0.40
codegen_flags: <defaults>
</compile_context>

<pallas_src>
import functools

import jax
import jax.numpy as jnp
import numpy as np
from jax import lax
from jax.experimental import pallas as pl
from jax.experimental.pallas import tpu as pltpu


# --------------------------- helpers -----------------------------------------

def _pick_tile(dim, cap, align):
    """Largest divisor of `dim` that is <= cap and a multiple of `align`; else full dim."""
    if dim <= cap:
        return dim
    for t in range(cap, align - 1, -1):
        if dim % t == 0 and t % align == 0:
            return t
    return dim


def _compiler_params(sem):
    return pltpu.CompilerParams(
        dimension_semantics=sem,
        vmem_limit_bytes=48 * 1024 * 1024,
    )


# --------------------------- Pallas kernels ---------------------------------

def _attn_block_kernel(src_ref, pos_ref, wqk_ref, bqk_ref, wv_ref, bv_ref,
                       wo_ref, bo_ref, g_ref, b_ref, o_ref,
                       *, nhead, scale, eps):
    # One batch element per grid step: fused QKV projection + all heads + out-proj
    # + residual + LayerNorm1. All matmuls are bf16 on the MXU with f32 accumulation.
    seq, e = src_ref.shape
    dh = e // nhead

    x = src_ref[...]                                              # (S, E) f32
    qk_in = (x + pos_ref[...]).astype(jnp.bfloat16)
    qk = jnp.dot(qk_in, wqk_ref[...],
                 preferred_element_type=jnp.float32) + bqk_ref[...]   # (S, 2E)
    v = jnp.dot(x.astype(jnp.bfloat16), wv_ref[...],
                preferred_element_type=jnp.float32) + bv_ref[...]     # (S, E)

    q = qk[:, :e] * scale
    k = qk[:, e:]

    heads = []
    for h in range(nhead):
        sl = slice(h * dh, (h + 1) * dh)
        qh = q[:, sl].astype(jnp.bfloat16)
        kh = k[:, sl].astype(jnp.bfloat16)
        vh = v[:, sl].astype(jnp.bfloat16)
        # scores: contract on Dh without an explicit transpose
        s = lax.dot_general(qh, kh, (((1,), (1,)), ((), ())),
                            preferred_element_type=jnp.float32)       # (S, S)
        m = jnp.max(s, axis=-1, keepdims=True)
        p = jnp.exp(s - m)                                            # unnormalized
        l = jnp.sum(p, axis=-1, keepdims=True)
        oh = jnp.dot(p.astype(jnp.bfloat16), vh,
                     preferred_element_type=jnp.float32)              # (S, Dh)
        heads.append(oh * pl.reciprocal(l, approx=True))              # fold 1/l post-matmul

    attn = jnp.concatenate(heads, axis=-1)                            # (S, E)
    proj = jnp.dot(attn.astype(jnp.bfloat16), wo_ref[...],
                   preferred_element_type=jnp.float32) + bo_ref[...]

    # src = norm1(src + dropout1(attn))   (dropout = identity in eval)
    y = x + proj
    mu = jnp.mean(y, axis=-1, keepdims=True)
    var = jnp.mean((y - mu) ** 2, axis=-1, keepdims=True)
    o_ref[...] = (y - mu) * lax.rsqrt(var + eps) * g_ref[...] + b_ref[...]


def _ffn_ln_kernel(h1_ref, w1_ref, b1_ref, w2_ref, b2_ref, g_ref, be_ref,
                   o_ref, acc_ref, *, eps):
    # grid = (M tiles, FF chunks): accumulate relu(x @ w1_f + b1_f) @ w2_f over FF chunks,
    # then finish with + b2, residual add and LayerNorm on the last chunk.
    @pl.when(pl.program_id(1) == 0)
    def _():
        acc_ref[...] = jnp.zeros_like(acc_ref)

    x = h1_ref[...]
    h = jnp.dot(x.astype(jnp.bfloat16), w1_ref[...],
                preferred_element_type=jnp.float32) + b1_ref[...]
    h = jnp.maximum(h, 0.0)
    acc_ref[...] += jnp.dot(h.astype(jnp.bfloat16), w2_ref[...],
                            preferred_element_type=jnp.float32)

    @pl.when(pl.program_id(1) == pl.num_programs(1) - 1)
    def _():
        y = x + acc_ref[...] + b2_ref[...]
        mu = jnp.mean(y, axis=-1, keepdims=True)
        var = jnp.mean((y - mu) ** 2, axis=-1, keepdims=True)
        o_ref[...] = (y - mu) * lax.rsqrt(var + eps) * g_ref[...] + be_ref[...]


# --------------------------- module forward ---------------------------------

def transformer_encoder_layer(src, pos, params, nhead, eps=1e-5):
    """forward_post: self-attn -> add&norm -> FFN -> add&norm. src/pos: (S, N, E)."""
    S, N, E = src.shape
    H = nhead
    Dh = E // H
    FF = params["w1"].shape[0]
    M = S * N
    bf16 = jnp.bfloat16

    # batch-leading layout so attention blocks are (1, S, E) with lane-dense last dims
    src_b = jnp.transpose(src, (1, 0, 2))          # (N, S, E)
    pos_b = jnp.transpose(pos, (1, 0, 2))

    # weights prepared once: concatenated QK projection, transposed, bf16 for the MXU
    w_qk = jnp.concatenate([params["wq"].T, params["wk"].T], axis=1).astype(bf16)  # (E, 2E)
    b_qk = jnp.concatenate([params["bq"], params["bk"]]).reshape(1, 2 * E)
    w_v = params["wv"].T.astype(bf16)
    b_v = params["bv"].reshape(1, E)
    w_o = params["wo"].T.astype(bf16)
    b_o = params["bo"].reshape(1, E)
    w_1 = params["w1"].T.astype(bf16)              # (E, FF)
    b_1 = params["b1"].reshape(1, FF)
    w_2 = params["w2"].T.astype(bf16)              # (FF, E)
    b_2 = params["b2"].reshape(1, E)
    g1 = params["g1"].reshape(1, E)
    be1 = params["be1"].reshape(1, E)
    g2 = params["g2"].reshape(1, E)
    be2 = params["be2"].reshape(1, E)

    # ---- kernel 1: fused QKV + attention + out-proj + add&norm1 (per batch) --
    attn_flops = (2 * M * E * (3 * E)          # QKV projections
                  + 4 * N * H * S * S * Dh     # QK^T and P@V
                  + 2 * M * E * E)             # output projection
    attn_bytes = (8 * M * E                    # src + pos (f32)
                  + 4 * M * E                  # h1 out (f32)
                  + 2 * (2 * E * E + E * E + E * E))   # bf16 weights

    h1 = pl.pallas_call(
        functools.partial(_attn_block_kernel, nhead=H, scale=float(Dh) ** -0.5, eps=eps),
        out_shape=jax.ShapeDtypeStruct((N, S, E), jnp.float32),
        grid=(N,),
        in_specs=[
            pl.BlockSpec((None, S, E), lambda n: (n, 0, 0)),   # src
            pl.BlockSpec((None, S, E), lambda n: (n, 0, 0)),   # pos
            pl.BlockSpec((E, 2 * E), lambda n: (0, 0)),        # Wqk
            pl.BlockSpec((1, 2 * E), lambda n: (0, 0)),        # bqk
            pl.BlockSpec((E, E), lambda n: (0, 0)),            # Wv
            pl.BlockSpec((1, E), lambda n: (0, 0)),            # bv
            pl.BlockSpec((E, E), lambda n: (0, 0)),            # Wo
            pl.BlockSpec((1, E), lambda n: (0, 0)),            # bo
            pl.BlockSpec((1, E), lambda n: (0, 0)),            # gamma1
            pl.BlockSpec((1, E), lambda n: (0, 0)),            # beta1
        ],
        out_specs=pl.BlockSpec((None, S, E), lambda n: (n, 0, 0)),
        compiler_params=_compiler_params(("parallel",)),
        cost_estimate=pl.CostEstimate(
            flops=attn_flops,
            transcendentals=N * H * S * S,
            bytes_accessed=attn_bytes,
        ),
    )(src_b, pos_b, w_qk, b_qk, w_v, b_v, w_o, b_o, g1, be1)

    # ---- kernel 2: FFN (FF-chunked) + add&norm2 ------------------------------
    h1_flat = h1.reshape(M, E)
    tm = _pick_tile(M, 512, 8)
    gm = M // tm
    tf = _pick_tile(FF, 2048, 128)
    gf = FF // tf

    out_flat = pl.pallas_call(
        functools.partial(_ffn_ln_kernel, eps=eps),
        out_shape=jax.ShapeDtypeStruct((M, E), jnp.float32),
        grid=(gm, gf),
        in_specs=[
            pl.BlockSpec((tm, E), lambda i, f: (i, 0)),
            pl.BlockSpec((E, tf), lambda i, f: (0, f)),
            pl.BlockSpec((1, tf), lambda i, f: (0, f)),
            pl.BlockSpec((tf, E), lambda i, f: (f, 0)),
            pl.BlockSpec((1, E), lambda i, f: (0, 0)),
            pl.BlockSpec((1, E), lambda i, f: (0, 0)),
            pl.BlockSpec((1, E), lambda i, f: (0, 0)),
        ],
        out_specs=pl.BlockSpec((tm, E), lambda i, f: (i, 0)),
        scratch_shapes=[pltpu.VMEM((tm, E), jnp.float32)],
        compiler_params=_compiler_params(("parallel", "arbitrary")),
        cost_estimate=pl.CostEstimate(
            flops=4 * M * E * FF,
            transcendentals=0,
            bytes_accessed=8 * M * E + 4 * E * FF,
        ),
    )(h1_flat, w_1, b_1, w_2, b_2, g2, be2)

    return jnp.transpose(out_flat.reshape(N, S, E), (1, 0, 2))


# --------------------------- pure-JAX reference ------------------------------

def reference(src, pos, params, nhead):
    S, N, E = src.shape
    H, Dh = nhead, E // nhead
    x = src.reshape(S * N, E)
    qk = (src + pos).reshape(S * N, E)
    q = qk @ params["wq"].T + params["bq"]
    k = qk @ params["wk"].T + params["bk"]
    v = x @ params["wv"].T + params["bv"]
    sh = lambda t: t.reshape(S, N, H, Dh).transpose(1, 2, 0, 3).reshape(N * H, S, Dh)
    qh, kh, vh = sh(q) * (Dh ** -0.5), sh(k), sh(v)
    s = jnp.einsum("bqd,bkd->bqk", qh, kh)
    p = jax.nn.softmax(s, axis=-1)
    oh = jnp.einsum("bqk,bkd->bqd", p, vh)
    attn = oh.reshape(N, H, S, Dh).transpose(2, 0, 1, 3).reshape(S * N, E)
    attn = attn @ params["wo"].T + params["bo"]

    def ln(y, g, b):
        mu = jnp.mean(y, -1, keepdims=True)
        var = jnp.mean((y - mu) ** 2, -1, keepdims=True)
        return (y - mu) * lax.rsqrt(var + 1e-5) * g + b

    h1 = ln(x + attn, params["g1"], params["be1"])
    ff = jnp.maximum(h1 @ params["w1"].T + params["b1"], 0.0) @ params["w2"].T + params["b2"]
    return ln(h1 + ff, params["g2"], params["be2"]).reshape(S, N, E)


# ------------------------------- main ----------------------------------------

if __name__ == "__main__":
    S, N, E, H, FF = 8, 2, 32, 4, 64  # seq, batch, d_model, nhead, dim_feedforward

    key = jax.random.PRNGKey(0)
    ks = jax.random.split(key, 14)

    def init(k, shape, scale=0.05):
        return (scale * jax.random.normal(k, shape)).astype(jnp.float32)

    params = dict(
        wq=init(ks[0], (E, E)), bq=init(ks[1], (E,)),
        wk=init(ks[2], (E, E)), bk=init(ks[3], (E,)),
        wv=init(ks[4], (E, E)), bv=init(ks[5], (E,)),
        wo=init(ks[6], (E, E)), bo=init(ks[7], (E,)),
        w1=init(ks[8], (FF, E)), b1=init(ks[9], (FF,)),
        w2=init(ks[10], (E, FF)), b2=init(ks[11], (E,)),
        g1=jnp.ones((E,), jnp.float32), be1=jnp.zeros((E,), jnp.float32),
        g2=jnp.ones((E,), jnp.float32), be2=jnp.zeros((E,), jnp.float32),
    )

    src = jax.random.normal(ks[12], (S, N, E), jnp.float32)
    pos = jax.random.normal(ks[13], (S, N, E), jnp.float32)

    out = transformer_encoder_layer(src, pos, params, nhead=H)
    jax.block_until_ready(out)

    ref = reference(src, pos, params, nhead=H)
    np.testing.assert_allclose(np.asarray(out), np.asarray(ref), rtol=2e-2, atol=2e-2)

    print("KERNEL_OK")
</pallas_src>

<mosaic_0001>
module attributes {stable_mosaic.version = 11 : i64} {
  func.func @_attn_block_kernel(%arg0: i32, %arg1: memref<1x8x32xf32, #tpu.memory_space<vmem>>, %arg2: memref<1x8x32xf32, #tpu.memory_space<vmem>>, %arg3: memref<32x64xbf16, #tpu.memory_space<vmem>>, %arg4: memref<1x64xf32, #tpu.memory_space<vmem>>, %arg5: memref<32x32xbf16, #tpu.memory_space<vmem>>, %arg6: memref<1x32xf32, #tpu.memory_space<vmem>>, %arg7: memref<32x32xbf16, #tpu.memory_space<vmem>>, %arg8: memref<1x32xf32, #tpu.memory_space<vmem>>, %arg9: memref<1x32xf32, #tpu.memory_space<vmem>>, %arg10: memref<1x32xf32, #tpu.memory_space<vmem>>, %arg11: memref<1x8x32xf32, #tpu.memory_space<vmem>>) attributes {dimension_semantics = [#tpu.dimension_semantics<parallel>], iteration_bounds = array<i64: 2>, scalar_prefetch = 0 : i64, scratch_operands = 0 : i64, tpu.core_type = #tpu.core_type<tc>, window_params = [{transform_indices = @transform_0, window_bounds = array<i64: 1, 8, 32>}, {transform_indices = @transform_1, window_bounds = array<i64: 1, 8, 32>}, {pipeline_mode = #tpu.pipeline_mode<synchronous>, transform_indices = @transform_2, window_bounds = array<i64: 32, 64>}, {pipeline_mode = #tpu.pipeline_mode<synchronous>, transform_indices = @transform_3, window_bounds = array<i64: 1, 64>}, {pipeline_mode = #tpu.pipeline_mode<synchronous>, transform_indices = @transform_4, window_bounds = array<i64: 32, 32>}, {pipeline_mode = #tpu.pipeline_mode<synchronous>, transform_indices = @transform_5, window_bounds = array<i64: 1, 32>}, {pipeline_mode = #tpu.pipeline_mode<synchronous>, transform_indices = @transform_6, window_bounds = array<i64: 32, 32>}, {pipeline_mode = #tpu.pipeline_mode<synchronous>, transform_indices = @transform_7, window_bounds = array<i64: 1, 32>}, {pipeline_mode = #tpu.pipeline_mode<synchronous>, transform_indices = @transform_8, window_bounds = array<i64: 1, 32>}, {pipeline_mode = #tpu.pipeline_mode<synchronous>, transform_indices = @transform_9, window_bounds = array<i64: 1, 32>}, {transform_indices = @transform_10, window_bounds = array<i64: 1, 8, 32>}]} {
    %c0 = arith.constant 0 : index
    %c0_0 = arith.constant 0 : index
    %c0_1 = arith.constant 0 : index
    %0 = vector.load %arg1[%c0, %c0_0, %c0_1] : memref<1x8x32xf32, #tpu.memory_space<vmem>>, vector<1x8x32xf32>
    %1 = vector.shape_cast %0 : vector<1x8x32xf32> to vector<8x32xf32>
    %c0_2 = arith.constant 0 : index
    %c0_3 = arith.constant 0 : index
    %c0_4 = arith.constant 0 : index
    %2 = vector.load %arg2[%c0_2, %c0_3, %c0_4] : memref<1x8x32xf32, #tpu.memory_space<vmem>>, vector<1x8x32xf32>
    %3 = vector.shape_cast %2 : vector<1x8x32xf32> to vector<8x32xf32>
    %4 = arith.addf %1, %3 : vector<8x32xf32>
    %5 = arith.truncf %4 : vector<8x32xf32> to vector<8x32xbf16>
    %c0_5 = arith.constant 0 : index
    %c0_6 = arith.constant 0 : index
    %6 = vector.load %arg3[%c0_5, %c0_6] : memref<32x64xbf16, #tpu.memory_space<vmem>>, vector<32x64xbf16>
    %cst = arith.constant dense<0.000000e+00> : vector<8x64xf32>
    %7 = tpu.matmul %5, %6, %cst {dimension_numbers = #tpu.dot_dimension_numbers<[1], [0], [0], [1], [0, 0, 1, 1], [], []>} : vector<8x32xbf16>, vector<32x64xbf16>, vector<8x64xf32> -> vector<8x64xf32>
    %c0_7 = arith.constant 0 : index
    %c0_8 = arith.constant 0 : index
    %8 = vector.load %arg4[%c0_7, %c0_8] : memref<1x64xf32, #tpu.memory_space<vmem>>, vector<1x64xf32>
    %9 = vector.broadcast %8 : vector<1x64xf32> to vector<8x64xf32>
    %10 = arith.addf %7, %9 : vector<8x64xf32>
    %11 = arith.truncf %1 : vector<8x32xf32> to vector<8x32xbf16>
    %c0_9 = arith.constant 0 : index
    %c0_10 = arith.constant 0 : index
    %12 = vector.load %arg5[%c0_9, %c0_10] : memref<32x32xbf16, #tpu.memory_space<vmem>>, vector<32x32xbf16>
    %cst_11 = arith.constant dense<0.000000e+00> : vector<8x32xf32>
    %13 = tpu.matmul %11, %12, %cst_11 {dimension_numbers = #tpu.dot_dimension_numbers<[1], [0], [0], [1], [0, 0, 1, 1], [], []>} : vector<8x32xbf16>, vector<32x32xbf16>, vector<8x32xf32> -> vector<8x32xf32>
    %c0_12 = arith.constant 0 : index
    %c0_13 = arith.constant 0 : index
    %14 = vector.load %arg6[%c0_12, %c0_13] : memref<1x32xf32, #tpu.memory_space<vmem>>, vector<1x32xf32>
    %15 = vector.broadcast %14 : vector<1x32xf32> to vector<8x32xf32>
    %16 = arith.addf %13, %15 : vector<8x32xf32>
    %17 = vector.extract_strided_slice %10 {offsets = [0, 0], sizes = [8, 32], strides = [1, 1]} : vector<8x64xf32> to vector<8x32xf32>
    %cst_14 = arith.constant 0.353553385 : f32
    %18 = vector.broadcast %cst_14 : f32 to vector<8x32xf32>
    %19 = arith.mulf %17, %18 : vector<8x32xf32>
    %20 = vector.extract_strided_slice %10 {offsets = [0, 32], sizes = [8, 32], strides = [1, 1]} : vector<8x64xf32> to vector<8x32xf32>
    %21 = vector.extract_strided_slice %19 {offsets = [0, 0], sizes = [8, 8], strides = [1, 1]} : vector<8x32xf32> to vector<8x8xf32>
    %22 = arith.truncf %21 : vector<8x8xf32> to vector<8x8xbf16>
    %23 = vector.extract_strided_slice %20 {offsets = [0, 0], sizes = [8, 8], strides = [1, 1]} : vector<8x32xf32> to vector<8x8xf32>
    %24 = arith.truncf %23 : vector<8x8xf32> to vector<8x8xbf16>
    %25 = vector.extract_strided_slice %16 {offsets = [0, 0], sizes = [8, 8], strides = [1, 1]} : vector<8x32xf32> to vector<8x8xf32>
    %26 = arith.truncf %25 : vector<8x8xf32> to vector<8x8xbf16>
    %cst_15 = arith.constant dense<0.000000e+00> : vector<8x8xf32>
    %27 = tpu.matmul %22, %24, %cst_15 {dimension_numbers = #tpu.dot_dimension_numbers<[1], [1], [0], [0], [0, 0, 1, 0], [], []>} : vector<8x8xbf16>, vector<8x8xbf16>, vector<8x8xf32> -> vector<8x8xf32>
    %cst_16 = arith.constant dense<0xFF800000> : vector<8xf32>
    %28 = vector.multi_reduction <maximumf>, %27, %cst_16 [1] : vector<8x8xf32> to vector<8xf32>
    %29 = vector.shape_cast %28 : vector<8xf32> to vector<8x1xf32>
    %30 = vector.broadcast %29 : vector<8x1xf32> to vector<8x8xf32>
    %31 = arith.subf %27, %30 : vector<8x8xf32>
    %32 = math.exp %31 : vector<8x8xf32>
    %cst_17 = arith.constant dense<0.000000e+00> : vector<8xf32>
    %33 = vector.multi_reduction <add>, %32, %cst_17 [1] : vector<8x8xf32> to vector<8xf32>
    %34 = vector.shape_cast %33 : vector<8xf32> to vector<8x1xf32>
    %35 = arith.truncf %32 : vector<8x8xf32> to vector<8x8xbf16>
    %cst_18 = arith.constant dense<0.000000e+00> : vector<8x8xf32>
    %36 = tpu.matmul %35, %26, %cst_18 {dimension_numbers = #tpu.dot_dimension_numbers<[1], [0], [0], [1], [0, 0, 1, 1], [], []>} : vector<8x8xbf16>, vector<8x8xbf16>, vector<8x8xf32> -> vector<8x8xf32>
    %37 = tpu.reciprocal %34 {approx = true} : vector<8x1xf32> -> vector<8x1xf32>
    %38 = vector.broadcast %37 : vector<8x1xf32> to vector<8x8xf32>
    %39 = arith.mulf %36, %38 : vector<8x8xf32>
    %40 = vector.extract_strided_slice %19 {offsets = [0, 8], sizes = [8, 8], strides = [1, 1]} : vector<8x32xf32> to vector<8x8xf32>
    %41 = arith.truncf %40 : vector<8x8xf32> to vector<8x8xbf16>
    %42 = vector.extract_strided_slice %20 {offsets = [0, 8], sizes = [8, 8], strides = [1, 1]} : vector<8x32xf32> to vector<8x8xf32>
    %43 = arith.truncf %42 : vector<8x8xf32> to vector<8x8xbf16>
    %44 = vector.extract_strided_slice %16 {offsets = [0, 8], sizes = [8, 8], strides = [1, 1]} : vector<8x32xf32> to vector<8x8xf32>
    %45 = arith.truncf %44 : vector<8x8xf32> to vector<8x8xbf16>
    %cst_19 = arith.constant dense<0.000000e+00> : vector<8x8xf32>
    %46 = tpu.matmul %41, %43, %cst_19 {dimension_numbers = #tpu.dot_dimension_numbers<[1], [1], [0], [0], [0, 0, 1, 0], [], []>} : vector<8x8xbf16>, vector<8x8xbf16>, vector<8x8xf32> -> vector<8x8xf32>
    %cst_20 = arith.constant dense<0xFF800000> : vector<8xf32>
    %47 = vector.multi_reduction <maximumf>, %46, %cst_20 [1] : vector<8x8xf32> to vector<8xf32>
    %48 = vector.shape_cast %47 : vector<8xf32> to vector<8x1xf32>
    %49 = vector.broadcast %48 : vector<8x1xf32> to vector<8x8xf32>
    %50 = arith.subf %46, %49 : vector<8x8xf32>
    %51 = math.exp %50 : vector<8x8xf32>
    %cst_21 = arith.constant dense<0.000000e+00> : vector<8xf32>
    %52 = vector.multi_reduction <add>, %51, %cst_21 [1] : vector<8x8xf32> to vector<8xf32>
    %53 = vector.shape_cast %52 : vector<8xf32> to vector<8x1xf32>
    %54 = arith.truncf %51 : vector<8x8xf32> to vector<8x8xbf16>
    %cst_22 = arith.constant dense<0.000000e+00> : vector<8x8xf32>
    %55 = tpu.matmul %54, %45, %cst_22 {dimension_numbers = #tpu.dot_dimension_numbers<[1], [0], [0], [1], [0, 0, 1, 1], [], []>} : vector<8x8xbf16>, vector<8x8xbf16>, vector<8x8xf32> -> vector<8x8xf32>
    %56 = tpu.reciprocal %53 {approx = true} : vector<8x1xf32> -> vector<8x1xf32>
    %57 = vector.broadcast %56 : vector<8x1xf32> to vector<8x8xf32>
    %58 = arith.mulf %55, %57 : vector<8x8xf32>
    %59 = vector.extract_strided_slice %19 {offsets = [0, 16], sizes = [8, 8], strides = [1, 1]} : vector<8x32xf32> to vector<8x8xf32>
    %60 = arith.truncf %59 : vector<8x8xf32> to vector<8x8xbf16>
    %61 = vector.extract_strided_slice %20 {offsets = [0, 16], sizes = [8, 8], strides = [1, 1]} : vector<8x32xf32> to vector<8x8xf32>
    %62 = arith.truncf %61 : vector<8x8xf32> to vector<8x8xbf16>
    %63 = vector.extract_strided_slice %16 {offsets = [0, 16], sizes = [8, 8], strides = [1, 1]} : vector<8x32xf32> to vector<8x8xf32>
    %64 = arith.truncf %63 : vector<8x8xf32> to vector<8x8xbf16>
    %cst_23 = arith.constant dense<0.000000e+00> : vector<8x8xf32>
    %65 = tpu.matmul %60, %62, %cst_23 {dimension_numbers = #tpu.dot_dimension_numbers<[1], [1], [0], [0], [0, 0, 1, 0], [], []>} : vector<8x8xbf16>, vector<8x8xbf16>, vector<8x8xf32> -> vector<8x8xf32>
    %cst_24 = arith.constant dense<0xFF800000> : vector<8xf32>
    %66 = vector.multi_reduction <maximumf>, %65, %cst_24 [1] : vector<8x8xf32> to vector<8xf32>
    %67 = vector.shape_cast %66 : vector<8xf32> to vector<8x1xf32>
    %68 = vector.broadcast %67 : vector<8x1xf32> to vector<8x8xf32>
    %69 = arith.subf %65, %68 : vector<8x8xf32>
    %70 = math.exp %69 : vector<8x8xf32>
    %cst_25 = arith.constant dense<0.000000e+00> : vector<8xf32>
    %71 = vector.multi_reduction <add>, %70, %cst_25 [1] : vector<8x8xf32> to vector<8xf32>
    %72 = vector.shape_cast %71 : vector<8xf32> to vector<8x1xf32>
    %73 = arith.truncf %70 : vector<8x8xf32> to vector<8x8xbf16>
    %cst_26 = arith.constant dense<0.000000e+00> : vector<8x8xf32>
    %74 = tpu.matmul %73, %64, %cst_26 {dimension_numbers = #tpu.dot_dimension_numbers<[1], [0], [0], [1], [0, 0, 1, 1], [], []>} : vector<8x8xbf16>, vector<8x8xbf16>, vector<8x8xf32> -> vector<8x8xf32>
    %75 = tpu.reciprocal %72 {approx = true} : vector<8x1xf32> -> vector<8x1xf32>
    %76 = vector.broadcast %75 : vector<8x1xf32> to vector<8x8xf32>
    %77 = arith.mulf %74, %76 : vector<8x8xf32>
    %78 = vector.extract_strided_slice %19 {offsets = [0, 24], sizes = [8, 8], strides = [1, 1]} : vector<8x32xf32> to vector<8x8xf32>
    %79 = arith.truncf %78 : vector<8x8xf32> to vector<8x8xbf16>
    %80 = vector.extract_strided_slice %20 {offsets = [0, 24], sizes = [8, 8], strides = [1, 1]} : vector<8x32xf32> to vector<8x8xf32>
    %81 = arith.truncf %80 : vector<8x8xf32> to vector<8x8xbf16>
    %82 = vector.extract_strided_slice %16 {offsets = [0, 24], sizes = [8, 8], strides = [1, 1]} : vector<8x32xf32> to vector<8x8xf32>
    %83 = arith.truncf %82 : vector<8x8xf32> to vector<8x8xbf16>
    %cst_27 = arith.constant dense<0.000000e+00> : vector<8x8xf32>
    %84 = tpu.matmul %79, %81, %cst_27 {dimension_numbers = #tpu.dot_dimension_numbers<[1], [1], [0], [0], [0, 0, 1, 0], [], []>} : vector<8x8xbf16>, vector<8x8xbf16>, vector<8x8xf32> -> vector<8x8xf32>
    %cst_28 = arith.constant dense<0xFF800000> : vector<8xf32>
    %85 = vector.multi_reduction <maximumf>, %84, %cst_28 [1] : vector<8x8xf32> to vector<8xf32>
    %86 = vector.shape_cast %85 : vector<8xf32> to vector<8x1xf32>
    %87 = vector.broadcast %86 : vector<8x1xf32> to vector<8x8xf32>
    %88 = arith.subf %84, %87 : vector<8x8xf32>
    %89 = math.exp %88 : vector<8x8xf32>
    %cst_29 = arith.constant dense<0.000000e+00> : vector<8xf32>
    %90 = vector.multi_reduction <add>, %89, %cst_29 [1] : vector<8x8xf32> to vector<8xf32>
    %91 = vector.shape_cast %90 : vector<8xf32> to vector<8x1xf32>
    %92 = arith.truncf %89 : vector<8x8xf32> to vector<8x8xbf16>
    %cst_30 = arith.constant dense<0.000000e+00> : vector<8x8xf32>
    %93 = tpu.matmul %92, %83, %cst_30 {dimension_numbers = #tpu.dot_dimension_numbers<[1], [0], [0], [1], [0, 0, 1, 1], [], []>} : vector<8x8xbf16>, vector<8x8xbf16>, vector<8x8xf32> -> vector<8x8xf32>
    %94 = tpu.reciprocal %91 {approx = true} : vector<8x1xf32> -> vector<8x1xf32>
    %95 = vector.broadcast %94 : vector<8x1xf32> to vector<8x8xf32>
    %96 = arith.mulf %93, %95 : vector<8x8xf32>
    %97 = tpu.concatenate %39, %58, %77, %96 in 1 : vector<8x8xf32>, vector<8x8xf32>, vector<8x8xf32>, vector<8x8xf32> -> vector<8x32xf32>
    %98 = arith.truncf %97 : vector<8x32xf32> to vector<8x32xbf16>
    %c0_31 = arith.constant 0 : index
    %c0_32 = arith.constant 0 : index
    %99 = vector.load %arg7[%c0_31, %c0_32] : memref<32x32xbf16, #tpu.memory_space<vmem>>, vector<32x32xbf16>
    %cst_33 = arith.constant dense<0.000000e+00> : vector<8x32xf32>
    %100 = tpu.matmul %98, %99, %cst_33 {dimension_numbers = #tpu.dot_dimension_numbers<[1], [0], [0], [1], [0, 0, 1, 1], [], []>} : vector<8x32xbf16>, vector<32x32xbf16>, vector<8x32xf32> -> vector<8x32xf32>
    %c0_34 = arith.constant 0 : index
    %c0_35 = arith.constant 0 : index
    %101 = vector.load %arg8[%c0_34, %c0_35] : memref<1x32xf32, #tpu.memory_space<vmem>>, vector<1x32xf32>
    %102 = vector.broadcast %101 : vector<1x32xf32> to vector<8x32xf32>
    %103 = arith.addf %100, %102 : vector<8x32xf32>
    %104 = arith.addf %1, %103 : vector<8x32xf32>
    %cst_36 = arith.constant dense<0.000000e+00> : vector<8xf32>
    %105 = vector.multi_reduction <add>, %104, %cst_36 [1] : vector<8x32xf32> to vector<8xf32>
    %106 = vector.shape_cast %105 : vector<8xf32> to vector<8x1xf32>
    %cst_37 = arith.constant 3.200000e+01 : f32
    %107 = vector.broadcast %cst_37 : f32 to vector<8x1xf32>
    %108 = arith.divf %106, %107 : vector<8x1xf32>
    %109 = vector.broadcast %108 : vector<8x1xf32> to vector<8x32xf32>
    %110 = arith.subf %104, %109 : vector<8x32xf32>
    %111 = arith.mulf %110, %110 : vector<8x32xf32>
    %cst_38 = arith.constant dense<0.000000e+00> : vector<8xf32>
    %112 = vector.multi_reduction <add>, %111, %cst_38 [1] : vector<8x32xf32> to vector<8xf32>
    %113 = vector.shape_cast %112 : vector<8xf32> to vector<8x1xf32>
    %cst_39 = arith.constant 3.200000e+01 : f32
    %114 = vector.broadcast %cst_39 : f32 to vector<8x1xf32>
    %115 = arith.divf %113, %114 : vector<8x1xf32>
    %116 = vector.broadcast %108 : vector<8x1xf32> to vector<8x32xf32>
    %117 = arith.subf %104, %116 : vector<8x32xf32>
    %cst_40 = arith.constant 9.99999974E-6 : f32
    %118 = vector.broadcast %cst_40 : f32 to vector<8x1xf32>
    %119 = arith.addf %115, %118 : vector<8x1xf32>
    %120 = math.rsqrt %119 : vector<8x1xf32>
    %121 = vector.broadcast %120 : vector<8x1xf32> to vector<8x32xf32>
    %122 = arith.mulf %117, %121 : vector<8x32xf32>
    %c0_41 = arith.constant 0 : index
    %c0_42 = arith.constant 0 : index
    %123 = vector.load %arg9[%c0_41, %c0_42] : memref<1x32xf32, #tpu.memory_space<vmem>>, vector<1x32xf32>
    %124 = vector.broadcast %123 : vector<1x32xf32> to vector<8x32xf32>
    %125 = arith.mulf %122, %124 : vector<8x32xf32>
    %c0_43 = arith.constant 0 : index
    %c0_44 = arith.constant 0 : index
    %126 = vector.load %arg10[%c0_43, %c0_44] : memref<1x32xf32, #tpu.memory_space<vmem>>, vector<1x32xf32>
    %127 = vector.broadcast %126 : vector<1x32xf32> to vector<8x32xf32>
    %128 = arith.addf %125, %127 : vector<8x32xf32>
    %c0_45 = arith.constant 0 : index
    %c0_46 = arith.constant 0 : index
    %c0_47 = arith.constant 0 : index
    %129 = vector.load %arg11[%c0_45, %c0_46, %c0_47] : memref<1x8x32xf32, #tpu.memory_space<vmem>>, vector<1x8x32xf32>
    %130 = vector.shape_cast %129 : vector<1x8x32xf32> to vector<8x32xf32>
    %131 = vector.shape_cast %128 : vector<8x32xf32> to vector<1x8x32xf32>
    tpu.vector_store %arg11[%c0_45, %c0_46, %c0_47], %131 {strides = array<i32>} : memref<1x8x32xf32, #tpu.memory_space<vmem>>, vector<1x8x32xf32>,
    return
  }
  func.func @transform_0(%arg0: i32) -> (i32, i32, i32) {
    %c0_i32 = arith.constant 0 : i32
    %c0_i32_0 = arith.constant 0 : i32
    %c0_i32_1 = arith.constant 0 : i32
    return %arg0, %c0_i32, %c0_i32_0 : i32, i32, i32
  }
  func.func @transform_1(%arg0: i32) -> (i32, i32, i32) {
    %c0_i32 = arith.constant 0 : i32
    %c0_i32_0 = arith.constant 0 : i32
    %c0_i32_1 = arith.constant 0 : i32
    return %arg0, %c0_i32, %c0_i32_0 : i32, i32, i32
  }
  func.func @transform_2(%arg0: i32) -> (i32, i32) {
    %c0_i32 = arith.constant 0 : i32
    %c0_i32_0 = arith.constant 0 : i32
    %c0_i32_1 = arith.constant 0 : i32
    return %c0_i32, %c0_i32_0 : i32, i32
  }
  func.func @transform_3(%arg0: i32) -> (i32, i32) {
    %c0_i32 = arith.constant 0 : i32
    %c0_i32_0 = arith.constant 0 : i32
    %c0_i32_1 = arith.constant 0 : i32
    return %c0_i32, %c0_i32_0 : i32, i32
  }
  func.func @transform_4(%arg0: i32) -> (i32, i32) {
    %c0_i32 = arith.constant 0 : i32
    %c0_i32_0 = arith.constant 0 : i32
    %c0_i32_1 = arith.constant 0 : i32
    return %c0_i32, %c0_i32_0 : i32, i32
  }
  func.func @transform_5(%arg0: i32) -> (i32, i32) {
    %c0_i32 = arith.constant 0 : i32
    %c0_i32_0 = arith.constant 0 : i32
    %c0_i32_1 = arith.constant 0 : i32
    return %c0_i32, %c0_i32_0 : i32, i32
  }
  func.func @transform_6(%arg0: i32) -> (i32, i32) {
    %c0_i32 = arith.constant 0 : i32
    %c0_i32_0 = arith.constant 0 : i32
    %c0_i32_1 = arith.constant 0 : i32
    return %c0_i32, %c0_i32_0 : i32, i32
  }
  func.func @transform_7(%arg0: i32) -> (i32, i32) {
    %c0_i32 = arith.constant 0 : i32
    %c0_i32_0 = arith.constant 0 : i32
    %c0_i32_1 = arith.constant 0 : i32
    return %c0_i32, %c0_i32_0 : i32, i32
  }
  func.func @transform_8(%arg0: i32) -> (i32, i32) {
    %c0_i32 = arith.constant 0 : i32
    %c0_i32_0 = arith.constant 0 : i32
    %c0_i32_1 = arith.constant 0 : i32
    return %c0_i32, %c0_i32_0 : i32, i32
  }
  func.func @transform_9(%arg0: i32) -> (i32, i32) {
    %c0_i32 = arith.constant 0 : i32
    %c0_i32_0 = arith.constant 0 : i32
    %c0_i32_1 = arith.constant 0 : i32
    return %c0_i32, %c0_i32_0 : i32, i32
  }
  func.func @transform_10(%arg0: i32) -> (i32, i32, i32) {
    %c0_i32 = arith.constant 0 : i32
    %c0_i32_0 = arith.constant 0 : i32
    %c0_i32_1 = arith.constant 0 : i32
    return %arg0, %c0_i32, %c0_i32_0 : i32, i32, i32
  }
}

</mosaic_0001>

<bundles_post_ra>
// kernel: tpu_custom_call.1
= control target key start
LH: loop header
LB: loop body
LE: loop exit
PB: predicated region body
PF: predicated region fallthrough
CT: control target
= control target key end

     0   :  { %s1745_s0 = inlined_call_operand.hbm [shape: f32[2,8,32], index: 0, kind: input, shape index: {}]   ;;  %s1746_s1 = inlined_call_operand.hbm [shape: f32[2,8,32], index: 1, kind: input, shape index: {}]   ;;  %s1747_s2 = inlined_call_operand.hbm [shape: bf16[32,64], index: 2, kind: input, shape index: {}]   ;;  %s1748_s3 = inlined_call_operand.vmem [shape: f32[1,64], index: 3, kind: input, shape index: {}]   ;;  %s1749_s4 = inlined_call_operand.hbm [shape: bf16[32,32], index: 4, kind: input, shape index: {}]   ;;  %s1750_s5 = inlined_call_operand.vmem [shape: f32[1,32], index: 5, kind: input, shape index: {}]   ;;  %s1751_s6 = inlined_call_operand.hbm [shape: bf16[32,32], index: 6, kind: input, shape index: {}]   ;;  %s1752_s7 = inlined_call_operand.vmem [shape: f32[1,32], index: 7, kind: input, shape index: {}]   ;;  %s1753_s8 = inlined_call_operand.vmem [shape: f32[1,32], index: 8, kind: input, shape index: {}]   ;;  %s1754_s9 = inlined_call_operand.vmem [shape: f32[1,32], index: 9, kind: input, shape index: {}]   ;;  %s1755_s10 = inlined_call_operand.hbm [shape: f32[2,8,32], index: 10, kind: output, shape index: {}]  }
   0x1   :  { %1762 = sst [smem:[#allocation23_spill]] %s1747_s2 }
   0x2   :  { %1763 = sst [smem:[#allocation24_spill]] %s1749_s4 }
   0x3   :  { %1764 = sst [smem:[#allocation25_spill]] %s1751_s6 }
   0x4   :  { %15 = vsyncpa [#allocation3], 0 }
   0x5   :  { %17 = vsyncpa [#allocation3 + $0x1], 0 }
   0x6   :  { %18 = vsyncpa [#allocation6], 0 }
   0x7   :  { %20 = vsyncpa [#allocation6 + $0x1], 0 }
   0x8   :  { %21 = vsyncpa [#allocation9], 0 }
   0x9   :  { %22 = vsyncpa [#allocation4], 0 }
   0xa   :  { %24 = vsyncpa [#allocation4 + $0x1], 0  ;;  %s1488_s13 = smov 0   ;;  %s1490_s14 = smov 0  }
   0xb   :  { %s1492_s15 = smov 0   ;;  %s1494_s16 = smov 0  }
   0xc LB: > { %1765 = sst [smem:[#allocation17_spill]] %s1403_s13  ;;  %s1512_s20 = sadd.s32 4294967295, %s1415_s16   ;;  %s1415_s16 = sphi %s1494_s16, %s1785_s16   ;;  %s1411_s15 = sphi %s1492_s15, %s1787_s15   ;;  %s1407_s14 = sphi %s1490_s14, %s1789_s14   ;;  %s1403_s13 = sphi %s1488_s13, %s1788_s13  }
   0xd   : > { %1766 = sst [smem:[#allocation18_spill]] %s1411_s15  ;;  %p1006_p0 = scmp.ge.s32.totalorder %s1415_s16, 1 }
   0xe   : > { %1767 = sst [smem:[#allocation19_spill]] %s1415_s16  ;;  %p51_p1 = scmp.eq.s32.totalorder %s1512_s20, 0 }
   0xf   : > { %s1768_s2 = sld [smem:[#allocation23_spill]]  ;;  %p281_p2 = scmp.lt.s32.totalorder %s1415_s16, 3 }
  0x10   : > { %s1417_s22 = smov [#allocation7]   ;;  %s1770_s4 = sld [smem:[#allocation24_spill]] }
  0x11   : > { %p1517_p3 = pnand %p1006_p0, %p281_p2  ;;  %s294_s23 = sshll.u32 %s1417_s22, 4  ;;  %s295_s23 = int_to_ptr.vmem [resolvable:$true] %s294_s23 }
  0x12   : > { %s1772_s6 = sld [smem:[#allocation25_spill]]  ;;  %s1418_s11 = smov [#allocation8]  }
  0x13   : > { %p1085_p4 = pneg %p1517_p3  ;;  %s311_s12 = sshll.u32 %s1418_s11, 4  ;;  %s312_s12 = int_to_ptr.vmem [resolvable:$true] %s311_s12 }
  0x14   : > { %s1419_s17 = smov 64   ;;  %s1420_s18 = smov 4  }
  0x15   : > { %s292_s19 = sshll.u32 %s1768_s2, 4  ;;  %p1529_p6 = pnand %p1085_p4, %p51_p1  ;;  %s293_s19 = int_to_ptr.hbm [resolvable:$true] %s292_s19 }
  0x16   : > { %s309_s26 = sshll.u32 %s1770_s4, 4  ;;  %s1421_s22 = smov [#allocation10]   ;;  %s310_s26 = int_to_ptr.hbm [resolvable:$true] %s309_s26 }
  0x17   : > { %1088 = dma.hbm_to_vmem [thread:$0]  (!%p1529_p6), %s293_s19, 256, %s295_s23, [#allocation6], %s1419_s17, %s1419_s17, %s1420_s18  }
  0x18   : > { %s326_s30 = sshll.u32 %s1772_s6, 4  ;;  %s328_s24 = sshll.u32 %s1421_s22, 4  ;;  %s327_s30 = int_to_ptr.hbm [resolvable:$true] %s326_s30  ;;  %s329_s24 = int_to_ptr.vmem [resolvable:$true] %s328_s24 }
  0x19   : > { %1091 = dma.hbm_to_vmem [thread:$0]  (!%p1529_p6), %s310_s26, 256, %s312_s12, [#allocation9], %s1419_s17, %s1419_s17, %s1420_s18  }
  0x1a   : > { %1094 = dma.hbm_to_vmem [thread:$0]  (!%p1529_p6), %s327_s30, 256, %s329_s24, [#allocation9], %s1419_s17, %s1419_s17, %s1420_s18  }
  0x1b   : > { %s1005_s25 = sadd.s32 4294967294, %s1415_s16   ;;  %s1544_s28 = sadd.s32 1, %s1415_s16  }
  0x1c   : > { %1773 = sst [smem:[#allocation20_spill]] %s1544_s28  ;;  %s37_s29 = sadd.s32 1, %s1411_s15 }
  0x1d   : > { %s34_s19 = ssub.s32 %s1415_s16, %s1544_s28  ;;  %p44_p7 = scmp.ne.s32.totalorder %s1411_s15, %s1407_s14 }
  0x1e   : > { %p35_p8 = scmp.eq.s32.totalorder %s34_s19, 0  ;;  %p45_p9 = scmp.eq.s32.totalorder %s1415_s16, 0 }
  0x1f   : > { %p50_p10 = scmp.ne.s32.totalorder %s1407_s14, %s1403_s13  ;;  %p268_p11 = scmp.eq.s32.totalorder %s1512_s20, 1 }
  0x20   : > { %s1556_s23 = scalar_select %p35_p8, %s1411_s15, %s37_s29  }
  0x21   : > { %p1558_p12 = por %p45_p9, %p44_p7  ;;  %p1564_p13 = por %p51_p1, %p50_p10 }
  0x22   : > { %1774 = sst [smem:[#allocation21_spill]] %s1556_s23  ;;  %p1568_p0 = por %p268_p11, %p44_p7 }
  0x23   : > { %p274_p2 = scmp.eq.s32.totalorder %s1005_s25, 1  ;;  %p1109_p4 = scmp.lt.s32.totalorder %s1415_s16, 2 }
  0x24   : > { %s351_s11 = sand.u32 1, %s1411_s15   ;;  %s1012_s18 = sshll.u32 %s1415_s16, 3 }
  0x25   : > { %p1574_p6 = por %p274_p2, %p50_p10  ;;  %s1011_s17 = sshll.u32 %s351_s11, 3 }
  0x26   : > { %s359_s29 = scalar_lea.hbm %s1745_s0, %s1012_s18  ;;  %s355_s2 = scalar_lea.vmem [#allocation2], %s1011_s17 }
  0x27   : > { %s1778_s12 = scalar_select %p1574_p6, 1, 0 }
  0x28   : > { %s361_s19 = sshll.u32 %s359_s29, 4  ;;  %s363_s4 = sshll.u32 %s355_s2, 4  ;;  %s362_s19 = int_to_ptr.hbm [resolvable:$true] %s361_s19  ;;  %s364_s4 = int_to_ptr.vmem [resolvable:$true] %s363_s4 }
  0x29   : > { %1779 = sst [smem:[#allocation22_spill]] %s1778_s12  ;;  %p1584_p7 = pnand %p1109_p4, %p1558_p12 }
  0x2a   : > { %s378_s15 = scalar_lea.hbm %s1746_s1, %s1012_s18  ;;  %s370_s28 = sand.u32 1, %s1415_s16  }
  0x2b   : > { %s352_s12 = scalar_lea.sflag [#allocation3], %s351_s11  ;;  %s1277_s22 = sshra.s32 %s362_s19, 4  ;;  %s1278_s22 = int_to_ptr.hbm [resolvable:$true] %s1277_s22 }
  0x2c   : > { %s1279_s24 = scalar_lea.hbm %s1278_s22, 8  ;;  %p1281_p9 = pneg %p1584_p7 }
  0x2d   : > { %p1280_p8 = scmp.ne.s32.totalorder %s1278_s22, %s1279_s24  ;;  %s1284_s29 = scalar_lea.hbm %s1745_s0, 16 }
  0x2e   : > { %p1285_p12 = scmp.lt.s32.totalorder %s1278_s22, %s1745_s0  ;;  %p1286_p2 = scmp.lt.s32.totalorder %s1284_s29, %s1279_s24 }
  0x2f   : > { %p1282_p10 = pnand %p1281_p9, %p1280_p8 }
  0x30   : > { %p1287_p4 = por %p1286_p2, %p1285_p12 }
  0x31   : > { %p1283_p11 = pneg %p1282_p10 }
  0x33   : > { %p1288_p5 = pnand %p1287_p4, %p1283_p11 }
  0x35   : > { %1291 = shalt.err (!%p1288_p5)
}
  0x36   : > { %1098 = dma.hbm_to_vmem [thread:$0]  (!%p1584_p7), %s362_s19, 128, %s364_s4, %s352_s12  }
  0x37   : > { %s380_s11 = sshll.u32 %s378_s15, 4  ;;  %s374_s18 = scalar_lea.vmem [#allocation5], %s1011_s17  ;;  %s381_s11 = int_to_ptr.hbm [resolvable:$true] %s380_s11 }
  0x38   : > { %s382_s16 = sshll.u32 %s374_s18, 4  ;;  %s371_s13 = scalar_lea.sflag [#allocation6], %s370_s28  ;;  %s383_s16 = int_to_ptr.vmem [resolvable:$true] %s382_s16 }
  0x39   : > { %s1307_s2 = sshra.s32 %s381_s11, 4  ;;  %s1314_s29 = scalar_lea.hbm %s1746_s1, 16  ;;  %s1308_s2 = int_to_ptr.hbm [resolvable:$true] %s1307_s2 }
  0x3a   : > { %s1309_s26 = scalar_lea.hbm %s1308_s2, 8  ;;  %p1315_p5 = scmp.lt.s32.totalorder %s1308_s2, %s1746_s1 }
  0x3b   : > { %p1310_p8 = scmp.ne.s32.totalorder %s1308_s2, %s1309_s26  ;;  %p1316_p11 = scmp.lt.s32.totalorder %s1314_s29, %s1309_s26 }
  0x3d   : > { %p1312_p10 = pnand %p1310_p8, %p1281_p9  ;;  %p1317_p2 = por %p1316_p11, %p1315_p5 }
  0x3f   : > { %p1313_p12 = pneg %p1312_p10 }
  0x41   : > { %p1318_p4 = pnand %p1317_p2, %p1313_p12 }
  0x43   : > { %1321 = shalt.err (!%p1318_p4)
}
  0x44   : > { %1101 = dma.hbm_to_vmem [thread:$0]  (!%p1584_p7), %s381_s11, 128, %s383_s16, %s371_s13  }
  0x45   : > { %391 = sbr.rel (%p1517_p3) target bundleno = 1547 (0x60b), region = 60  ;;  %s1619_s15 = sand.u32 (!%p1517_p3), 1, %s1407_s14  }
  0x46   : > { %s1622_s28 = sshll.u32 (!%p1517_p3), %s1619_s15, 3  ;;  %s394_s12 = scalar_lea.sflag (!%p1517_p3), [#allocation3], %s1619_s15 }
  0x47   : > { %s397_s17 = scalar_lea.vmem (!%p1517_p3), [#allocation2], %s1622_s28 }
  0x4a   : > { %1382 = dma.done.wait (%p1564_p13), %s394_s12, 128  }
  0x4b   : > { %1384 = vsyncadd (%p1564_p13), %s394_s12, 4294967168  ;;  %s403_s13 = sand.u32 1, %s1512_s20   ;;  %s407_s21 = scalar_lea.vmem [#allocation5], %s1622_s28 }
  0x4c   : > { %s404_s16 = scalar_lea.sflag [#allocation6], %s403_s13 }
  0x4d   : > { %1386 = dma.done.wait (%p1564_p13), %s404_s16, 128  }
  0x4e   : > { %1388 = vsyncadd (%p1564_p13), %s404_s16, 4294967168 }
  0x4f   : > { %1390 = dma.done.wait (%p51_p1), [#allocation6], 256  }
  0x50   : > { %1392 = vsyncadd (%p51_p1), [#allocation6], 4294967040 }
  0x51   : > { %1394 = dma.done.wait (%p51_p1), [#allocation9], 512  }
  0x52   : > { %1396 = vsyncadd (%p51_p1), [#allocation9], 4294966784  ;;  %v1062_v0 = vld [vmem:[#allocation7 + $0x8] sm:$0xff]  ;;  %v1061_v2 = vld [vmem:[#allocation7] sm:$0xff]  ;;  %vm490_vm0 = vcmask 261120   ;;  %s1422_s25 = smov 80  }
  0x53   : > { %v1644_v1 = vld [vmem:[%s397_s17] sm:$0xff]  ;;  %v467_v3 = vld [vmem:[%s407_s21] sm:$0xff]  ;;  %500 = vmatpush.bf16.msra.mxu0 %v1062_v0  ;;  %s1423_s23 = smov 88   ;;  %s1424_s11 = smov 96   ;;  %vm584_vm1 = vcmask 1043456   ;;  %vm551_vm2 = vcmask 64512  }
  0x54   : > { %v1064_v4 = vld [vmem:[#allocation8 + $0x8] sm:$0xff]  ;;  %v468_v5 = vadd.f32 %v467_v3, %v1644_v1  ;;  %v1063_v6 = vld [vmem:[#allocation8] sm:$0xff]  ;;  %v507_v8 = vpack.c.bf16 %v1644_v1, %v1644_v1  ;;  %v1162_v9 = vld [vmem:[%s1748_s3] ss:$0 sm:$0xff]  ;;  %s1425_s18 = smov 72   ;;  %s1426_s2 = smov 120  }
  0x55   : > { %537 = vmatpush.bf16.msra.mxu1 %v1064_v4  ;;  %s1427_s26 = smov 104   ;;  %s1428_s22 = smov 112   ;;  %v1163_v16 = vld [vmem:[%s1750_s5] ss:$0 sm:$0xff]  ;;  %vm786_vm3 = vcmask 130048   ;;  %vm788_vm4 = vcmask 195584  }
  0x56   : > { %v469_v7 = vpack.c.bf16 %v468_v5, %v468_v5  ;;  %s1429_s6 = smov 8   ;;  %s1430_s4 = smov 24  }
  0x57   : > { %501 = vmatpush.bf16.msra.mxu0 %v1061_v2  ;;  %s1431_s12 = smov 16   ;;  %s1058_s16 = sshll.u32 %s1512_s20, 3 }
  0x58   : > { %s464_s20 = scalar_lea.vmem [#allocation11], %s1622_s28  ;;  %s1357_s28 = scalar_lea.hbm %s1755_s10, 16 }
  0x59   : > { %538 = vmatpush.bf16.msra.mxu1 %v1063_v6 }
  0x5a   : > { %1030 = vmatmul.msk.bf16.vlgmr.msra.gmra.mxu0 %vm490_vm0, %v469_v7 }
  0x5c   : > { %1039 = vmatmul.msk.bf16.vlgmr.msra.gmra.mxu1 %vm490_vm0, %v507_v8 }
  0xd7   : > { %v503_v10 = vpop.f32.mrf.mxu0 }
  0xd8   : > { %v504_v11 = vadd.f32 %v1162_v9, %v503_v10 }
  0xd9   : > { %v540_v17 = vpop.f32.mrf.mxu1 }
  0xda   : > { %v546_v12 = vpack.c.bf16 %v504_v11, %v504_v11  ;;  %v544_v13 = vmul.f32 0.35355338, %v504_v11  ;;  %v541_v18 = vadd.f32 %v1163_v16, %v540_v17 }
  0xdc   : > { %663 = vrot.lane.b32.xlu2 %v546_v12, %s1422_s25  ;;  %606 = vrot.lane.b32.xlu1 %v546_v12, %s1423_s23  ;;  %v545_v15 = vpack.c.bf16 %v544_v13, %v544_v13  ;;  %v1660_v19 = vpack.c.bf16 %v541_v18, %v541_v18  ;;  %s879_s23 = scalar_lea.hbm %s1755_s10, %s1058_s16 }
  0xdd   : > { %549 = vrot.lane.b32.xlu0 %v546_v12, %s1424_s11 }
  0xde   : > { %v586_v21 = vsel %vm584_vm1, %v1660_v19, 0 }
  0xdf   : > { %v505_v14 = vpop.f32.mrf.mxu0  ;;  %595 = vmatpush.bf16.msra.mxu3 %v586_v21 }
  0xe1   : > { %v542_v20 = vpop.f32.mrf.mxu1 }
  0xe4   : > { %719 = vrot.lane.b32.xlu2 %v546_v12, %s1425_s18  ;;  %604 = vrot.lane.b32.xlu1 %v545_v15, %s1426_s2 }
  0xec   : > { %717 = vrot.lane.b32.xlu2 %v545_v15, %s1427_s26  ;;  %661 = vrot.lane.b32.xlu1 %v545_v15, %s1428_s22 }
 0x136   : > { %v664_v22 = vpop.permute.xlu2 %663 }
 0x137   : > { %v669_v23 = vsel %vm551_vm2, %v664_v22, 0 }
 0x138   : > { %678 = vmatpush.bf16.xpose.msrb.mxu1 %v669_v23 }
 0x13e   : > { %v720_v36 = vpop.permute.xlu2 %719 }
 0x13f   : > { %v725_v48 = vsel %vm551_vm2, %v720_v36, 0 }
 0x146   : > { %v718_v37 = vpop.permute.xlu2 %717 }
 0x14e   : > { %v607_v24 = vpop.permute.xlu1 %606 }
 0x14f   : > { %v550_v25 = vpop.permute.xlu0 %549  ;;  %v612_v26 = vsel %vm551_vm2, %v607_v24, 0 }
 0x150   : > { %v556_v27 = vsel %vm551_vm2, %v550_v25, 0  ;;  %621 = vmatpush.bf16.xpose.msrb.mxu3 %v612_v26 }
 0x151   : > { %565 = vmatpush.bf16.xpose.msra.mxu2 %v556_v27 }
 0x156   : > { %v605_v28 = vpop.permute.xlu1 %604 }
 0x158   : > { %1040 = vmatmul.msk.bf16.vlgmr.msra.gmra.mxu2 %vm551_vm2, %v545_v15 }
 0x15e   : > { %v662_v29 = vpop.permute.xlu1 %661 }
 0x15f   : > { %1044 = vmatmul.msk.bf16.vlgmr.msrb.gmra.mxu1 %vm551_vm2, %v662_v29  ;;  %v1066_v29 = vld [vmem:[#allocation10 + $0x8] sm:$0xff] }
 0x160   : > { %820 = vmatpush.bf16.msra.mxu1 %v1066_v29 }
 0x1db   : > { %v567_v30 = vpop.f32.mrf.mxu2 }
 0x1dc   : > { %v680_v31 = vpop.f32.mrf.mxu1  ;;  %v571_v32 = vsel %vm551_vm2, %v567_v30, -inf }
 0x1dd   : > { %572 = vmax.xlane.f32.xlu0 %v571_v32  ;;  %v684_v33 = vsel %vm551_vm2, %v680_v31, -inf }
 0x1de   : > { %685 = vmax.xlane.f32.xlu2 %v684_v33 }
 0x1e3   : > { %v569_v34 = vpop.f32.mrf.mxu2 }
 0x1e4   : > { %v682_v35 = vpop.f32.mrf.mxu1 }
 0x1f1   : > { %638 = vrot.lane.b32.xlu0 %v1660_v19, %s1426_s2  ;;  %s881_s2 = sshll.u32 %s464_s20, 4  ;;  %s882_s2 = int_to_ptr.vmem [resolvable:$true] %s881_s2 }
 0x1f9   : > { %750 = vrot.lane.b32.xlu0 %v1660_v19, %s1427_s26  ;;  %s883_s26 = sshll.u32 %s879_s23, 4  ;;  %s884_s26 = int_to_ptr.hbm [resolvable:$true] %s883_s26 }
 0x1fa   : > { %s1351_s24 = sshra.s32 %s884_s26, 4  ;;  %s1352_s24 = int_to_ptr.hbm [resolvable:$true] %s1351_s24 }
 0x1fb   : > { %s1353_s29 = scalar_lea.hbm %s1352_s24, 8  ;;  %p1358_p7 = scmp.lt.s32.totalorder %s1352_s24, %s1755_s10 }
 0x1fc   : > { %p1354_p1 = scmp.ne.s32.totalorder %s1352_s24, %s1353_s29  ;;  %p1359_p9 = scmp.lt.s32.totalorder %s1357_s28, %s1353_s29 }
 0x1fe   : > { %p1355_p3 = pnand %p1354_p1, %p1568_p0  ;;  %p1360_p8 = por %p1359_p9, %p1358_p7 }
 0x200   : > { %p1356_p13 = pneg %p1355_p3 }
 0x202   : > { %p1361_p10 = pnand %p1360_p8, %p1356_p13 }
 0x250   : > { %v573_v38 = vpop.xlane.xlu0 %572 }
 0x251   : > { %v574_v39 = vsub.f32 %v567_v30, %v573_v38  ;;  %v686_v40 = vpop.xlane.xlu2 %685  ;;  %v1065_v30 = vld [vmem:[#allocation10] sm:$0xff] }
 0x252   : > { %v687_v41 = vsub.f32 %v680_v31, %v686_v40  ;;  %821 = vmatpush.bf16.msra.mxu1 %v1065_v30 }
 0x253   : > { %v575_v42 = vmul.f32 1.442695, %v574_v39 }
 0x254   : > { %v688_v43 = vmul.f32 1.442695, %v687_v41  ;;  %v1164_v41 = vld [vmem:[%s1752_s7] ss:$0 sm:$0xff] }
 0x255   : > { %1167 = vpow2.f32 %v575_v42 }
 0x256   : > { %1169 = vpow2.f32 %v688_v43 }
 0x25b   : > { %v1168_v44 = vpop.eup %1167 }
 0x25c   : > { %v1170_v45 = vpop.eup %1169  ;;  %v580_v46 = vpack.c.bf16 %v1168_v44, %v1168_v44  ;;  %v577_v13 = vsel %vm551_vm2, %v1168_v44, 0.0 }
 0x25d   : > { %v690_v47 = vsel %vm551_vm2, %v1170_v45, 0.0  ;;  %v693_v10 = vpack.c.bf16 %v1170_v45, %v1170_v45 }
 0x25e   : > { %1041 = vmatmul.msk.bf16.vlgmr.msra.gmra.mxu3 %vm551_vm2, %v580_v46  ;;  %691 = vadd.xlane.f32.xlu0 %v690_v47  ;;  %v1432_v47 = vmov 32.0  }
 0x25f   : > { %734 = vmatpush.bf16.xpose.msra.mxu3 %v725_v48 }
 0x263   : > { %v639_v49 = vpop.permute.xlu0 %638 }
 0x264   : > { %v644_v50 = vsel %vm584_vm1, %v639_v49, 0 }
 0x265   : > { %653 = vmatpush.bf16.msrb.mxu0 %v644_v50 }
 0x26b   : > { %v751_v51 = vpop.permute.xlu0 %750 }
 0x26c   : > { %v756_v52 = vsel %vm584_vm1, %v751_v51, 0 }
 0x26d   : > { %765 = vmatpush.bf16.msra.mxu0 %v756_v52 }
 0x26e   : > { %1042 = vmatmul.msk.bf16.vlgmr.msrb.gmra.mxu3 %vm551_vm2, %v605_v28 }
 0x27e   : > { %1046 = vmatmul.msk.bf16.vlgmr.msra.gmra.mxu3 %vm551_vm2, %v718_v37 }
 0x2d1   : > { %v692_v20 = vpop.xlane.xlu0 %691 }
 0x2e1   : > { %v1682_v53 = vpop.f32.mrf.mxu3 }
 0x2e9   : > { %v599_v54 = vpop.f32.mrf.mxu3 }
 0x2f1   : > { %v623_v55 = vpop.f32.mrf.mxu3 }
 0x2f2   : > { %v627_v56 = vsel %vm551_vm2, %v623_v55, -inf }
 0x2f3   : > { %628 = vmax.xlane.f32.xlu1 %v627_v56 }
 0x2f9   : > { %v625_v57 = vpop.f32.mrf.mxu3 }
 0x301   : > { %v736_v58 = vpop.f32.mrf.mxu3 }
 0x302   : > { %v740_v59 = vsel %vm551_vm2, %v736_v58, -inf }
 0x303   : > { %741 = vmax.xlane.f32.xlu2 %v740_v59 }
 0x309   : > { %v738_v60 = vpop.f32.mrf.mxu3 }
 0x30c   : > { %694 = vrot.lane.b32.xlu1 %v1660_v19, %s1428_s22  ;;  %s869_s22 = scalar_lea.sflag [#allocation4], %s1619_s15 }
 0x366   : > { %v629_v61 = vpop.xlane.xlu1 %628 }
 0x367   : > { %v630_v62 = vsub.f32 %v623_v55, %v629_v61 }
 0x369   : > { %v631_v63 = vmul.f32 1.442695, %v630_v62 }
 0x36b   : > { %1171 = vpow2.f32 %v631_v63 }
 0x371   : > { %v1172_v0 = vpop.eup %1171 }
 0x372   : > { %v633_v2 = vsel %vm551_vm2, %v1172_v0, 0.0  ;;  %v636_v3 = vpack.c.bf16 %v1172_v0, %v1172_v0 }
 0x373   : > { %634 = vadd.xlane.f32.xlu2 %v633_v2 }
 0x374   : > { %1043 = vmatmul.msk.bf16.vlgmr.msrb.gmra.mxu0 %vm551_vm2, %v636_v3 }
 0x376   : > { %v742_v4 = vpop.xlane.xlu2 %741 }
 0x377   : > { %v743_v5 = vsub.f32 %v736_v58, %v742_v4  ;;  %v1165_v4 = vld [vmem:[%s1753_s8] ss:$0 sm:$0xff] }
 0x379   : > { %v744_v6 = vmul.f32 1.442695, %v743_v5 }
 0x37b   : > { %1173 = vpow2.f32 %v744_v6 }
 0x37e   : > { %v695_v7 = vpop.permute.xlu1 %694 }
 0x37f   : > { %v700_v8 = vsel %vm584_vm1, %v695_v7, 0  ;;  %v1166_v7 = vld [vmem:[%s1754_s9] ss:$0 sm:$0xff] }
 0x380   : > { %709 = vmatpush.bf16.msrb.mxu2 %v700_v8 }
 0x381   : > { %v1174_v9 = vpop.eup %1173 }
 0x382   : > { %v749_v11 = vpack.c.bf16 %v1174_v9, %v1174_v9  ;;  %v746_v12 = vsel %vm551_vm2, %v1174_v9, 0.0 }
 0x383   : > { %1045 = vmatmul.msk.bf16.vlgmr.msrb.gmra.mxu2 %vm551_vm2, %v693_v10  ;;  %747 = vadd.xlane.f32.xlu2 %v746_v12 }
 0x384   : > { %1047 = vmatmul.msk.bf16.vlgmr.msra.gmra.mxu0 %vm551_vm2, %v749_v11 }
 0x38b   : > { %578 = vadd.xlane.f32.xlu2 %v577_v13 }
 0x3e6   : > { %v635_v14 = vpop.xlane.xlu2 %634 }
 0x3e7   : > { %1175 = vrcp.f32 %v635_v14 }
 0x3ed   : > { %v1176_v15 = vpop.eup %1175 }
 0x3f1   : > { %v655_v16 = vpop.f32.mrf.mxu0 }
 0x3f2   : > { %v660_v17 = vmul.f32 %v1176_v15, %v655_v16 }
 0x3f4   : > { %774 = vrot.lane.b32.xlu1 %v660_v17, %s1429_s6 }
 0x3f6   : > { %v748_v18 = vpop.xlane.xlu2 %747 }
 0x3f7   : > { %1177 = vrcp.f32 %v748_v18 }
 0x3f8   : > { %1179 = vrcp.f32 %v692_v20 }
 0x3f9   : > { %v657_v19 = vpop.f32.mrf.mxu0 }
 0x3fd   : > { %v1178_v21 = vpop.eup %1177 }
 0x3fe   : > { %v1180_v24 = vpop.eup %1179  ;;  %v579_v31 = vpop.xlane.xlu2 %578 }
 0x3ff   : > { %1181 = vrcp.f32 %v579_v31 }
 0x400   : > { %1183 = vrcp.f32 %v1432_v47 }
 0x401   : > { %v767_v22 = vpop.f32.mrf.mxu0 }
 0x402   : > { %v772_v23 = vmul.f32 %v1178_v21, %v767_v22 }
 0x404   : > { %782 = vrot.lane.b32.xlu1 %v772_v23, %s1430_s4 }
 0x405   : > { %v1182_v32 = vpop.eup %1181 }
 0x406   : > { %v711_v25 = vpop.f32.mrf.mxu2  ;;  %v602_v34 = vmul.f32 %v1182_v32, %v1682_v53  ;;  %v1184_v48 = vpop.eup %1183 }
 0x407   : > { %v716_v26 = vmul.f32 %v1180_v24, %v711_v25  ;;  %v832_v49 = vmul.f32 32.0, %v1184_v48  ;;  %vm836_vm5 = vweird.f32 %v1184_v48 }
 0x409   : > { %v769_v27 = vpop.f32.mrf.mxu0  ;;  %778 = vrot.lane.b32.xlu2 %v716_v26, %s1431_s12  ;;  %v833_v50 = vsub.f32 1.0, %v832_v49 }
 0x40b   : > { %v834_v51 = vmul.f32 %v1184_v48, %v833_v50 }
 0x40d   : > { %v835_v52 = vadd.f32 %v1184_v48, %v834_v51 }
 0x40e   : > { %v713_v28 = vpop.f32.mrf.mxu2 }
 0x40f   : > { %v837_v53 = vsel %vm836_vm5, %v1184_v48, %v835_v52 }
 0x463   : > { %v779_v36 = vpop.permute.xlu2 %778 }
 0x466   : > { %v775_v33 = vpop.permute.xlu1 %774 }
 0x467   : > { %v785_v35 = vsel %vm551_vm2, %v602_v34, %v775_v33 }
 0x468   : > { %v787_v38 = vsel %vm786_vm3, %v785_v35, %v779_v36 }
 0x476   : > { %v783_v37 = vpop.permute.xlu1 %782 }
 0x477   : > { %v789_v39 = vsel %vm788_vm4, %v787_v38, %v783_v37 }
 0x478   : > { %v790_v40 = vpack.c.bf16 %v789_v39, %v789_v39 }
 0x47a   : > { %1056 = vmatmul.msk.bf16.vlgmr.msra.gmra.mxu1 %vm490_vm0, %v790_v40 }
 0x4f7   : > { %v823_v42 = vpop.f32.mrf.mxu1 }
 0x4f8   : > { %v824_v43 = vadd.f32 %v1164_v41, %v823_v42 }
 0x4fa   : > { %v827_v44 = vadd.f32 %v824_v43, %v1644_v1 }
 0x4fc   : > { %v828_v45 = vsel %vm490_vm0, %v827_v44, 0.0 }
 0x4fd   : > { %829 = vadd.xlane.f32.xlu1 %v828_v45 }
 0x4ff   : > { %v825_v46 = vpop.f32.mrf.mxu1 }
 0x570   : > { %v830_v54 = vpop.xlane.xlu1 %829 }
 0x571   : > { %v838_v55 = vmul.f32 %v837_v53, %v830_v54 }
 0x573   : > { %v839_v56 = vsub.f32 %v827_v44, %v838_v55 }
 0x575   : > { %v840_v57 = vmul.f32 %v839_v56, %v839_v56 }
 0x577   : > { %v841_v1 = vsel %vm490_vm0, %v840_v57, 0.0 }
 0x578   : > { %842 = vadd.xlane.f32.xlu0 %v841_v1 }
 0x5eb   : > { %v843_v58 = vpop.xlane.xlu0 %842 }
 0x5ec   : > { %v844_v59 = vmul.f32 %v843_v58, %v837_v53 }
 0x5ee   : > { %v845_v60 = vadd.f32 1e-05, %v844_v59 }
 0x5f0   : > { %1185 = vrsqrt.f32 %v845_v60  ;;  %vm852_vm7 = vweird.f32 %v845_v60 }
 0x5f6   : > { %v1186_v61 = vpop.eup %1185 }
 0x5f7   : > { %v847_v62 = vmul.f32 %v1186_v61, %v845_v60  ;;  %vm853_vm6 = vweird.f32 %v1186_v61 }
 0x5f8   : > { %vm854_vm8 = vmor %vm852_vm7, %vm853_vm6 }
 0x5f9   : > { %v848_v63 = vmul.f32 %v1186_v61, %v847_v62 }
 0x5fb   : > { %v849_v0 = vmul.f32 0.5, %v848_v63 }
 0x5fd   : > { %v850_v2 = vsub.f32 1.5, %v849_v0 }
 0x5ff   : > { %v851_v3 = vmul.f32 %v1186_v61, %v850_v2 }
 0x601   : > { %v855_v5 = vsel %vm854_vm8, %v1186_v61, %v851_v3 }
 0x602   : > { %v856_v6 = vmul.f32 %v855_v5, %v839_v56 }
 0x604   : > { %v861_v8 = vmul.f32 %v1165_v4, %v856_v6 }
 0x606   : > { %v866_v9 = vadd.f32 %v1166_v7, %v861_v8 }
 0x608   : > { %867 = vst.msk [vmem:[%s464_s20] sm:$0xff] %vm490_vm0, %v866_v9 }
 0x609   : > { %1364 = shalt.err (!%p1361_p10)
}
 0x60a   : > { %1083 = dma.vmem_to_hbm [thread:$0]  (%p1568_p0), %s882_s2, 128, %s884_s26, %s869_s22  }
 0x60b PF: > { %s1781_s15 = sld [smem:[#allocation17_spill]] }
 0x60c   : > { %s1783_s16 = sld [smem:[#allocation19_spill]] }
 0x611   : > { %s895_s21 = sand.u32 1, %s1781_s15  }
 0x612   : > { %p1784_p12 = scmp.ge.s32.totalorder %s1783_s16, 2  ;;  %s896_s27 = scalar_lea.sflag [#allocation4], %s895_s21 }
 0x614   : > { %p1103_p5 = pnand %p1784_p12, %p1574_p6 }
 0x616   : > { %p1104_p11 = pneg %p1103_p5 }
 0x618   : > { %1398 = dma.done.wait (%p1104_p11), %s896_s27, 128  }
 0x619   : > { %1400 = vsyncadd (%p1104_p11), %s896_s27, 4294967168  ;;  %s1785_s16 = sld [smem:[#allocation20_spill]]  ;;  %s1788_s13 = smov %s1407_s14 }
 0x61a   : > { %s1786_s19 = sld [smem:[#allocation18_spill]] }
 0x61b   : > { %s1787_s15 = sld [smem:[#allocation21_spill]] }
 0x61f   : > { %p27_p2 = scmp.ge.s32.totalorder %s1785_s16, 4  }
 0x620   : > { %s1789_s14 = smov %s1786_s19 }
 0x621   :  { %29 = sbr.rel (!%p27_p2) target bundleno = 12 (0xc), region = 130 }
 0x626   :  { %902 = vsyncpa [#allocation3], 1 }
 0x627   :  { %904 = vsyncpa [#allocation3 + $0x1], 1 }
 0x628   :  { %905 = vsyncpa [#allocation6], 1 }
 0x629   :  { %907 = vsyncpa [#allocation6 + $0x1], 1 }
 0x62a   :  { %908 = vsyncpa [#allocation9], 1 }
 0x62b   :  { %909 = vsyncpa [#allocation4], 1 }
 0x62c   :  { %911 = vsyncpa [#allocation4 + $0x1], 1 }

</bundles_post_ra>
